<compile_context>
chip_gen: v5e
topology: v5e:2x2
jax: 0.10.0
libtpu: 0.0.40
codegen_flags: <defaults>
</compile_context>

<pallas_src>
import functools
import math

import jax
import jax.numpy as jnp
from jax.experimental import pallas as pl
from jax.experimental.pallas import tpu as pltpu


def _round_up(n, m):
    return ((n + m - 1) // m) * m


def _linear_ln_pe_kernel(x_ref, w_ref, b_ref, g_ref, beta_ref, pe_ref, o_ref,
                         *, inv_odim):
    """o = LayerNorm(x @ W + b) * sqrt(odim) + pe, with sqrt folded into g/beta.

    Matmul: bf16 operands on the MXU, f32 accumulation. LayerNorm math in f32.
    All math is row-local, so padded rows of a ragged last T-tile are harmless
    (their stores are masked by Pallas).
    """
    y = jnp.dot(x_ref[...].astype(jnp.bfloat16), w_ref[...],      # w is bf16
                preferred_element_type=jnp.float32)               # (tm_t, odim) f32
    y = y + b_ref[...]

    # Single-pass LN statistics (E[x^2] - mean^2), eps = 1e-5.
    s = jnp.sum(y, axis=-1, keepdims=True)
    ss = jnp.sum(y * y, axis=-1, keepdims=True)
    mean = s * inv_odim
    var = ss * inv_odim - mean * mean
    xn = (y - mean) * jax.lax.rsqrt(var + 1e-5)

    out = xn * g_ref[...] + beta_ref[...] + pe_ref[...]           # g/beta pre-scaled
    o_ref[...] = out.astype(o_ref.dtype)


def linear_ln_posenc_pallas(x, prep, pe, *, tm=1024):
    """Fused Linear -> LayerNorm -> *sqrt(odim) + pos_emb.

    Args:
      x:    (B, T, idim) activations.
      prep: dict from prepare_params(): w (idim,odim) bf16, b/g/beta (1,odim) f32
            with gamma/beta already multiplied by sqrt(odim).
      pe:   (T, odim) positional-encoding slice.
      tm:   T-tile size (rows per grid step), clamped to round_up(T, 8).
    Returns:
      (B, T, odim) array in x.dtype.
    """
    b_sz, t_sz, idim = x.shape
    odim = prep["w"].shape[1]
    tm_t = min(_round_up(tm, 8), _round_up(t_sz, 8))

    kernel = functools.partial(_linear_ln_pe_kernel, inv_odim=float(1.0 / odim))
    return pl.pallas_call(
        kernel,
        out_shape=jax.ShapeDtypeStruct((b_sz, t_sz, odim), x.dtype),
        grid=(b_sz, pl.cdiv(t_sz, tm_t)),
        in_specs=[
            pl.BlockSpec((None, tm_t, idim), lambda b, t: (b, t, 0)),  # x
            pl.BlockSpec((idim, odim), lambda b, t: (0, 0)),           # W (bf16)
            pl.BlockSpec((1, odim), lambda b, t: (0, 0)),              # bias
            pl.BlockSpec((1, odim), lambda b, t: (0, 0)),              # gamma*sqrt(odim)
            pl.BlockSpec((1, odim), lambda b, t: (0, 0)),              # beta*sqrt(odim)
            pl.BlockSpec((tm_t, odim), lambda b, t: (t, 0)),           # pos_emb slice
        ],
        out_specs=pl.BlockSpec((None, tm_t, odim), lambda b, t: (b, t, 0)),
        # Small VMEM footprint (few MiB double-buffered) -> default scoped limit
        # is plenty on v5e/v6e/v7x; no vmem_limit_bytes needed.
        compiler_params=pltpu.CompilerParams(
            dimension_semantics=("parallel", "parallel")),
    )(x, prep["w"], prep["b"], prep["g"], prep["beta"], pe)


def sinusoidal_pos_emb(size, d_model, offset=0, dtype=jnp.float32):
    """wenet PositionalEncoding table slice pe[offset:offset+size]: (size, d_model)."""
    pos = jnp.arange(offset, offset + size, dtype=jnp.float32)[:, None]
    div = jnp.exp(jnp.arange(0, d_model, 2, dtype=jnp.float32)
                  * (-math.log(10000.0) / d_model))
    pe = jnp.zeros((size, d_model), jnp.float32)
    pe = pe.at[:, 0::2].set(jnp.sin(pos * div))
    pe = pe.at[:, 1::2].set(jnp.cos(pos * div))
    return pe.astype(dtype)


def prepare_params(params, odim):
    """One-time parameter prep (hoisted out of the jitted forward)."""
    scale = math.sqrt(odim)
    return {
        # torch Linear stores (odim, idim); we keep the (idim, odim) transpose,
        # cast once to bf16 for the MXU fast path.
        "w": params["w"].astype(jnp.bfloat16),
        "b": params["b"].astype(jnp.float32).reshape(1, odim),
        # Fold the PositionalEncoding xscale = sqrt(odim) into LN's affine.
        "g": (params["ln_gamma"].astype(jnp.float32) * scale).reshape(1, odim),
        "beta": (params["ln_beta"].astype(jnp.float32) * scale).reshape(1, odim),
    }


def linear_no_subsampling(x, x_mask, prep, *, offset=0, tm=1024):
    """Forward pass mirroring LinearNoSubsampling.forward (eval mode).

    Args:
      x:      (B, T, idim) float
      x_mask: (B, 1, T) bool
    Returns:
      (y, pos_emb, x_mask) with y (B, T, odim), pos_emb (1, T, odim).
    """
    _, t_sz, _ = x.shape
    odim = prep["w"].shape[1]
    pe = sinusoidal_pos_emb(t_sz, odim, offset=offset, dtype=x.dtype)  # (T, odim)
    y = linear_ln_posenc_pallas(x, prep, pe, tm=tm)
    # TODO(synk): dropout after LN and inside PositionalEncoding is identity
    # (inference semantics); `offset` supported as a static Python int only.
    return y, pe[None], x_mask


if __name__ == "__main__":
    B, T, IDIM, ODIM = 2, 16, 80, 256   # idim=80 fbank-like, odim=256

    key = jax.random.PRNGKey(0)
    kx, kw, kb = jax.random.split(key, 3)
    bound = 1.0 / math.sqrt(IDIM)
    params = {
        "w": jax.random.uniform(kw, (IDIM, ODIM), jnp.float32, -bound, bound),
        "b": jax.random.uniform(kb, (ODIM,), jnp.float32, -bound, bound),
        "ln_gamma": jnp.ones((ODIM,), jnp.float32),   # torch LayerNorm defaults
        "ln_beta": jnp.zeros((ODIM,), jnp.float32),
    }
    prep = prepare_params(params, ODIM)

    x = jax.random.normal(kx, (B, T, IDIM), jnp.float32)
    lengths = jnp.array([12, 16], jnp.int32)
    x_mask = (jnp.arange(T)[None, None, :] < lengths[:, None, None])

    fwd = jax.jit(functools.partial(linear_no_subsampling, offset=0, tm=1024))
    y, pos_emb, out_mask = fwd(x, x_mask, prep)
    jax.block_until_ready((y, pos_emb, out_mask))

    # Pure-JAX reference (unfused) following the same bf16-matmul / f32-LN numerics.
    def ref(x, params):
        h = jnp.dot(x.reshape(-1, IDIM).astype(jnp.bfloat16),
                    params["w"].astype(jnp.bfloat16),
                    preferred_element_type=jnp.float32) + params["b"]
        mean = jnp.mean(h, axis=-1, keepdims=True)
        var = jnp.mean((h - mean) ** 2, axis=-1, keepdims=True)
        hn = (h - mean) * jax.lax.rsqrt(var + 1e-5) * params["ln_gamma"] + params["ln_beta"]
        hn = hn.reshape(B, T, ODIM)
        return hn * math.sqrt(ODIM) + sinusoidal_pos_emb(T, ODIM)[None]

    y_ref = ref(x, params)

    assert y.shape == (B, T, ODIM)
    assert pos_emb.shape == (1, T, ODIM)
    assert out_mask.shape == (B, 1, T)
    err = float(jnp.max(jnp.abs(y - y_ref)))
    assert err < 3e-2, err
    print("KERNEL_OK")
</pallas_src>

<mosaic_0001>
module attributes {stable_mosaic.version = 11 : i64} {
  func.func @_linear_ln_pe_kernel(%arg0: i32, %arg1: i32, %arg2: memref<1x16x80xf32, #tpu.memory_space<vmem>>, %arg3: memref<80x256xbf16, #tpu.memory_space<vmem>>, %arg4: memref<1x256xf32, #tpu.memory_space<vmem>>, %arg5: memref<1x256xf32, #tpu.memory_space<vmem>>, %arg6: memref<1x256xf32, #tpu.memory_space<vmem>>, %arg7: memref<16x256xf32, #tpu.memory_space<vmem>>, %arg8: memref<1x16x256xf32, #tpu.memory_space<vmem>>) attributes {dimension_semantics = [#tpu.dimension_semantics<parallel>, #tpu.dimension_semantics<parallel>], iteration_bounds = array<i64: 2, 1>, scalar_prefetch = 0 : i64, scratch_operands = 0 : i64, tpu.core_type = #tpu.core_type<tc>, window_params = [{transform_indices = @transform_0, window_bounds = array<i64: 1, 16, 80>}, {pipeline_mode = #tpu.pipeline_mode<synchronous>, transform_indices = @transform_1, window_bounds = array<i64: 80, 256>}, {pipeline_mode = #tpu.pipeline_mode<synchronous>, transform_indices = @transform_2, window_bounds = array<i64: 1, 256>}, {pipeline_mode = #tpu.pipeline_mode<synchronous>, transform_indices = @transform_3, window_bounds = array<i64: 1, 256>}, {pipeline_mode = #tpu.pipeline_mode<synchronous>, transform_indices = @transform_4, window_bounds = array<i64: 1, 256>}, {transform_indices = @transform_5, window_bounds = array<i64: 16, 256>}, {transform_indices = @transform_6, window_bounds = array<i64: 1, 16, 256>}]} {
    %c0 = arith.constant 0 : index
    %c0_0 = arith.constant 0 : index
    %c0_1 = arith.constant 0 : index
    %0 = vector.load %arg2[%c0, %c0_0, %c0_1] : memref<1x16x80xf32, #tpu.memory_space<vmem>>, vector<1x16x80xf32>
    %1 = vector.shape_cast %0 : vector<1x16x80xf32> to vector<16x80xf32>
    %2 = arith.truncf %1 : vector<16x80xf32> to vector<16x80xbf16>
    %c0_2 = arith.constant 0 : index
    %c0_3 = arith.constant 0 : index
    %3 = vector.load %arg3[%c0_2, %c0_3] : memref<80x256xbf16, #tpu.memory_space<vmem>>, vector<80x256xbf16>
    %cst = arith.constant dense<0.000000e+00> : vector<16x256xf32>
    %4 = tpu.matmul %2, %3, %cst {dimension_numbers = #tpu.dot_dimension_numbers<[1], [0], [0], [1], [0, 0, 1, 1], [], []>} : vector<16x80xbf16>, vector<80x256xbf16>, vector<16x256xf32> -> vector<16x256xf32>
    %c0_4 = arith.constant 0 : index
    %c0_5 = arith.constant 0 : index
    %5 = vector.load %arg4[%c0_4, %c0_5] : memref<1x256xf32, #tpu.memory_space<vmem>>, vector<1x256xf32>
    %6 = vector.broadcast %5 : vector<1x256xf32> to vector<16x256xf32>
    %7 = arith.addf %4, %6 : vector<16x256xf32>
    %cst_6 = arith.constant dense<0.000000e+00> : vector<16xf32>
    %8 = vector.multi_reduction <add>, %7, %cst_6 [1] : vector<16x256xf32> to vector<16xf32>
    %9 = vector.shape_cast %8 : vector<16xf32> to vector<16x1xf32>
    %10 = arith.mulf %7, %7 : vector<16x256xf32>
    %cst_7 = arith.constant dense<0.000000e+00> : vector<16xf32>
    %11 = vector.multi_reduction <add>, %10, %cst_7 [1] : vector<16x256xf32> to vector<16xf32>
    %12 = vector.shape_cast %11 : vector<16xf32> to vector<16x1xf32>
    %cst_8 = arith.constant 3.906250e-03 : f32
    %13 = vector.broadcast %cst_8 : f32 to vector<16x1xf32>
    %14 = arith.mulf %9, %13 : vector<16x1xf32>
    %cst_9 = arith.constant 3.906250e-03 : f32
    %15 = vector.broadcast %cst_9 : f32 to vector<16x1xf32>
    %16 = arith.mulf %12, %15 : vector<16x1xf32>
    %17 = arith.mulf %14, %14 : vector<16x1xf32>
    %18 = arith.subf %16, %17 : vector<16x1xf32>
    %19 = vector.broadcast %14 : vector<16x1xf32> to vector<16x256xf32>
    %20 = arith.subf %7, %19 : vector<16x256xf32>
    %cst_10 = arith.constant 9.99999974E-6 : f32
    %21 = vector.broadcast %cst_10 : f32 to vector<16x1xf32>
    %22 = arith.addf %18, %21 : vector<16x1xf32>
    %23 = math.rsqrt %22 : vector<16x1xf32>
    %24 = vector.broadcast %23 : vector<16x1xf32> to vector<16x256xf32>
    %25 = arith.mulf %20, %24 : vector<16x256xf32>
    %c0_11 = arith.constant 0 : index
    %c0_12 = arith.constant 0 : index
    %26 = vector.load %arg5[%c0_11, %c0_12] : memref<1x256xf32, #tpu.memory_space<vmem>>, vector<1x256xf32>
    %27 = vector.broadcast %26 : vector<1x256xf32> to vector<16x256xf32>
    %28 = arith.mulf %25, %27 : vector<16x256xf32>
    %c0_13 = arith.constant 0 : index
    %c0_14 = arith.constant 0 : index
    %29 = vector.load %arg6[%c0_13, %c0_14] : memref<1x256xf32, #tpu.memory_space<vmem>>, vector<1x256xf32>
    %30 = vector.broadcast %29 : vector<1x256xf32> to vector<16x256xf32>
    %31 = arith.addf %28, %30 : vector<16x256xf32>
    %c0_15 = arith.constant 0 : index
    %c0_16 = arith.constant 0 : index
    %32 = vector.load %arg7[%c0_15, %c0_16] : memref<16x256xf32, #tpu.memory_space<vmem>>, vector<16x256xf32>
    %33 = arith.addf %31, %32 : vector<16x256xf32>
    %c0_17 = arith.constant 0 : index
    %c0_18 = arith.constant 0 : index
    %c0_19 = arith.constant 0 : index
    %34 = vector.load %arg8[%c0_17, %c0_18, %c0_19] : memref<1x16x256xf32, #tpu.memory_space<vmem>>, vector<1x16x256xf32>
    %35 = vector.shape_cast %34 : vector<1x16x256xf32> to vector<16x256xf32>
    %36 = vector.shape_cast %33 : vector<16x256xf32> to vector<1x16x256xf32>
    tpu.vector_store %arg8[%c0_17, %c0_18, %c0_19], %36 {strides = array<i32>} : memref<1x16x256xf32, #tpu.memory_space<vmem>>, vector<1x16x256xf32>,
    return
  }
  func.func @transform_0(%arg0: i32, %arg1: i32) -> (i32, i32, i32) {
    %c0_i32 = arith.constant 0 : i32
    %c0_i32_0 = arith.constant 0 : i32
    return %arg0, %arg1, %c0_i32 : i32, i32, i32
  }
  func.func @transform_1(%arg0: i32, %arg1: i32) -> (i32, i32) {
    %c0_i32 = arith.constant 0 : i32
    %c0_i32_0 = arith.constant 0 : i32
    %c0_i32_1 = arith.constant 0 : i32
    return %c0_i32, %c0_i32_0 : i32, i32
  }
  func.func @transform_2(%arg0: i32, %arg1: i32) -> (i32, i32) {
    %c0_i32 = arith.constant 0 : i32
    %c0_i32_0 = arith.constant 0 : i32
    %c0_i32_1 = arith.constant 0 : i32
    return %c0_i32, %c0_i32_0 : i32, i32
  }
  func.func @transform_3(%arg0: i32, %arg1: i32) -> (i32, i32) {
    %c0_i32 = arith.constant 0 : i32
    %c0_i32_0 = arith.constant 0 : i32
    %c0_i32_1 = arith.constant 0 : i32
    return %c0_i32, %c0_i32_0 : i32, i32
  }
  func.func @transform_4(%arg0: i32, %arg1: i32) -> (i32, i32) {
    %c0_i32 = arith.constant 0 : i32
    %c0_i32_0 = arith.constant 0 : i32
    %c0_i32_1 = arith.constant 0 : i32
    return %c0_i32, %c0_i32_0 : i32, i32
  }
  func.func @transform_5(%arg0: i32, %arg1: i32) -> (i32, i32) {
    %c0_i32 = arith.constant 0 : i32
    %c0_i32_0 = arith.constant 0 : i32
    return %arg1, %c0_i32 : i32, i32
  }
  func.func @transform_6(%arg0: i32, %arg1: i32) -> (i32, i32, i32) {
    %c0_i32 = arith.constant 0 : i32
    %c0_i32_0 = arith.constant 0 : i32
    return %arg0, %arg1, %c0_i32 : i32, i32, i32
  }
}

</mosaic_0001>

<bundles_post_ra>
// kernel: linear_no_subsampling.1
= control target key start
LH: loop header
LB: loop body
LE: loop exit
PB: predicated region body
PF: predicated region fallthrough
CT: control target
= control target key end

     0   :  { %11 = vsyncpa [#allocation3], 0  ;;  %s1047_s0 = inlined_call_operand.vmem [shape: f32[2,16,80], index: 0, kind: input, shape index: {}]   ;;  %s1048_s1 = inlined_call_operand.vmem [shape: bf16[80,256], index: 1, kind: input, shape index: {}]   ;;  %s1049_s2 = inlined_call_operand.vmem [shape: f32[1,256], index: 2, kind: input, shape index: {}]   ;;  %s1050_s3 = inlined_call_operand.vmem [shape: f32[1,256], index: 3, kind: input, shape index: {}]   ;;  %s1051_s4 = inlined_call_operand.vmem [shape: f32[1,256], index: 4, kind: input, shape index: {}]   ;;  %s1052_s5 = inlined_call_operand.vmem [shape: f32[16,256], index: 5, kind: input, shape index: {}]   ;;  %s1053_s6 = inlined_call_operand.hbm [shape: f32[2,16,256], index: 6, kind: output, shape index: {}]  }
   0x1   :  { %13 = vsyncpa [#allocation3 + $0x1], 0  ;;  %s853_s21 = smov 0   ;;  %s855_s22 = smov 0  }
   0x2   :  { %s857_s23 = smov 0   ;;  %s859_s24 = smov 0  }
   0x3   :  { %s861_s25 = smov 0   ;;  %s863_s26 = smov 0  }
   0x4 LB: > { %s607_s27 = sadd.s32 4294967295, %s814_s26   ;;  %s608_s28 = sadd.s32 4294967294, %s814_s26   ;;  %s814_s26 = sphi %s863_s26, %s19_s26   ;;  %s810_s25 = sphi %s861_s25, %s1060_s25   ;;  %s806_s24 = sphi %s859_s24, %s1059_s24   ;;  %s802_s23 = sphi %s857_s23, %s1058_s23   ;;  %s798_s22 = sphi %s855_s22, %s1057_s22   ;;  %s794_s21 = sphi %s853_s21, %s1056_s21  }
   0x5   : > { %s31_s29 = sadd.s32 1, %s810_s25  ;;  %s178_s30 = sadd.s32 1, %s802_s23 }
   0x6   : > { %p33_p0 = scmp.ge.s32.totalorder %s31_s29, 2  ;;  %p188_p1 = scmp.ne.s32.totalorder %s802_s23, %s798_s22 }
   0x7   : > { %p189_p2 = scmp.eq.s32.totalorder %s607_s27, 1  ;;  %p194_p3 = scmp.ne.s32.totalorder %s798_s22, %s794_s21 }
   0x8   : > { %s1062_s29 = smov (%p33_p0, %s31_s29), 0  ;;  %p195_p5 = scmp.eq.s32.totalorder %s608_s28, 1 }
   0x9   : > { %p893_p4 = por %p189_p2, %p188_p1  ;;  %s173_s8 = ssub.s32 %s810_s25, %s1062_s29 }
   0xa   : > { %p612_p6 = scmp.ge.s32.totalorder %s814_s26, 1  ;;  %p176_p7 = scmp.eq.s32.totalorder %s173_s8, 0 }
   0xb   : > { %p900_p8 = por %p195_p5, %p194_p3  ;;  %p248_p9 = scmp.lt.s32.totalorder %s814_s26, 3 }
   0xc   : > { %s906_s10 = scalar_select %p176_p7, %s802_s23, %s178_s30  }
   0xd   : > { %p249_p10 = pnand %p612_p6, %p248_p9 }
   0xe   : > { %p289_p11 = scmp.lt.s32.totalorder (!%p249_p10), %s806_s24, 1  ;;  %s285_s20 = sand.u32 (!%p249_p10), 1, %s798_s22  }
   0xf   : > { %252 = sbr.rel (%p249_p10) target bundleno = 336 (0x150), region = 44  ;;  %s613_s27 = sshll.u32 (!%p249_p10), %s285_s20, 5 }
  0x10   : > { %s287_s13 = scalar_lea.vmem (!%p249_p10), [#allocation2], %s613_s27  ;;  %s756_s15 = scalar_lea.hbm (!%p249_p10), %s1053_s6, 64 }
  0x11   : > { %s510_s28 = sshll.u32 (!%p249_p10), %s287_s13, 4  ;;  %s511_s28 = int_to_ptr.vmem [resolvable:$true] %s510_s28 }
  0x14   : > { %v650_v0 = vld [vmem:[%s1048_s1 + $0x40] sm:$0xf]  ;;  %v673_v1 = vld [vmem:[%s1048_s1 + $0x44] sm:$0xf0]  ;;  %v672_v2 = vld [vmem:[%s1048_s1 + $0x44] sm:$0xf] }
  0x15   : > { %v651_v3 = vor.u32 %v673_v1, %v650_v0  ;;  %v652_v4 = vld [vmem:[%s1048_s1 + $0x48] sm:$0xf0]  ;;  %v642_v5 = vld [vmem:[%s1048_s1 + $0x30] sm:$0xf]  ;;  %v671_v6 = vld [vmem:[%s1048_s1 + $0x34] sm:$0xf0] }
  0x16   : > { %v655_v7 = vor.u32 %v672_v2, %v652_v4  ;;  %v670_v8 = vld [vmem:[%s1048_s1 + $0x34] sm:$0xf]  ;;  %v644_v9 = vld [vmem:[%s1048_s1 + $0x38] sm:$0xf0]  ;;  %v643_v10 = vor.u32 %v671_v6, %v642_v5  ;;  %v634_v12 = vld [vmem:[%s1048_s1 + $0x20] sm:$0xf] }
  0x17   : > { %383 = vmatpush.bf16.msra.mxu0 %v651_v3  ;;  %v647_v11 = vor.u32 %v670_v8, %v644_v9  ;;  %v669_v13 = vld [vmem:[%s1048_s1 + $0x24] sm:$0xf0]  ;;  %v668_v14 = vld [vmem:[%s1048_s1 + $0x24] sm:$0xf]  ;;  %v636_v15 = vld [vmem:[%s1048_s1 + $0x28] sm:$0xf0] }
  0x18   : > { %397 = vmatpush.bf16.msra.mxu1 %v655_v7  ;;  %v635_v16 = vor.u32 %v669_v13, %v634_v12  ;;  %v639_v17 = vor.u32 %v668_v14, %v636_v15  ;;  %v626_v18 = vld [vmem:[%s1048_s1 + $0x10] sm:$0xf]  ;;  %v667_v19 = vld [vmem:[%s1048_s1 + $0x14] sm:$0xf0]  ;;  %s290_s11 = scalar_select %p289_p11, %s806_s24, 1  ;;  %vm376_vm0 = vcmask 654336  }
  0x19   : > { %v666_v20 = vld [vmem:[%s1048_s1 + $0x14] sm:$0xf]  ;;  %v628_v21 = vld [vmem:[%s1048_s1 + $0x18] sm:$0xf0]  ;;  %v627_v22 = vor.u32 %v667_v19, %v626_v18  ;;  %v618_v24 = vld [vmem:[%s1048_s1] sm:$0xf] }
  0x1a   : > { %s663_s16 = sshll.u32 %s290_s11, 4  ;;  %v631_v23 = vor.u32 %v666_v20, %v628_v21  ;;  %v665_v25 = vld [vmem:[%s1048_s1 + $0x4] sm:$0xf0]  ;;  %v664_v26 = vld [vmem:[%s1048_s1 + $0x4] sm:$0xf]  ;;  %s674_s11 = sshll.u32 %s806_s24, 5 }
  0x1b   : > { %384 = vmatpush.bf16.msra.mxu0 %v643_v10  ;;  %s296_s30 = scalar_lea.vmem %s1047_s0, %s663_s16  ;;  %v620_v27 = vld [vmem:[%s1048_s1 + $0x8] sm:$0xf0]  ;;  %v619_v28 = vor.u32 %v665_v25, %v618_v24  ;;  %v320_v33 = vld [vmem:[%s1049_s2] sm:$0x3]  ;;  %s509_s16 = scalar_lea.hbm %s1053_s6, %s674_s11 }
  0x1c   : > { %398 = vmatpush.bf16.msra.mxu1 %v647_v11  ;;  %v307_v29 = vld [vmem:[%s296_s30] sm:$0xff]  ;;  %v308_v30 = vld [vmem:[%s296_s30 + $0x8] sm:$0xff]  ;;  %v623_v31 = vor.u32 %v664_v26, %v620_v27  ;;  %v322_v34 = vperm.slane %v320_v33, 0  ;;  %v323_v35 = vperm.slane %v320_v33, 1  ;;  %s512_s27 = sshll.u32 %s509_s16, 4  ;;  %s495_s30 = scalar_lea.sflag [#allocation3], %s285_s20  ;;  %s513_s27 = int_to_ptr.hbm [resolvable:$true] %s512_s27 }
  0x1d   : > { %v309_v32 = vpack.c.bf16 %v308_v30, %v307_v29  ;;  %v462_v6 = vld [vmem:[%s1050_s3] sm:$0x3]  ;;  %v483_v26 = vld [vmem:[%s1052_s5 + $0x8] sm:$0xff]  ;;  %s750_s8 = sshra.s32 %s513_s27, 4  ;;  %s751_s8 = int_to_ptr.hbm [resolvable:$true] %s750_s8 }
  0x1e   : > { %v472_v9 = vld [vmem:[%s1051_s4] sm:$0x3]  ;;  %v464_v14 = vperm.slane %v462_v6, 0  ;;  %v465_v15 = vperm.slane %v462_v6, 1  ;;  %s752_s12 = scalar_lea.hbm %s751_s8, 32  ;;  %p757_p1 = scmp.lt.s32.totalorder %s751_s8, %s1053_s6 }
  0x1f   : > { %385 = vmatpush.bf16.msra.mxu0 %v635_v16  ;;  %v474_v18 = vperm.slane %v472_v9, 0  ;;  %v475_v19 = vperm.slane %v472_v9, 1  ;;  %v482_v25 = vld [vmem:[%s1052_s5] sm:$0xff]  ;;  %p753_p12 = scmp.ne.s32.totalorder %s751_s8, %s752_s12  ;;  %p758_p2 = scmp.lt.s32.totalorder %s756_s15, %s752_s12 }
  0x20   : > { %399 = vmatpush.bf16.msra.mxu1 %v639_v17 }
  0x21   : > { %p754_p13 = pnand %p753_p12, %p893_p4  ;;  %p759_p3 = por %p758_p2, %p757_p1 }
  0x23   : > { %386 = vmatpush.bf16.msra.mxu0 %v627_v22  ;;  %p755_p0 = pneg %p754_p13 }
  0x24   : > { %400 = vmatpush.bf16.msra.mxu1 %v631_v23 }
  0x25   : > { %p760_p5 = pnand %p759_p3, %p755_p0 }
  0x27   : > { %387 = vmatpush.bf16.msra.mxu0 %v619_v28 }
  0x28   : > { %401 = vmatpush.bf16.msra.mxu1 %v623_v31 }
  0x2a   : > { %656 = vmatmul.msk.bf16.vlgmr.msra.gmra.mxu0 %vm376_vm0, %v309_v32 }
  0x2b   : > { %657 = vmatmul.msk.bf16.vlgmr.msra.gmra.mxu1 %vm376_vm0, %v309_v32 }
  0xa7   : > { %v389_v36 = vpop.f32.mrf.mxu0 }
  0xa8   : > { %v390_v37 = vadd.f32 %v389_v36, %v322_v34  ;;  %v403_v38 = vpop.f32.mrf.mxu1 }
  0xa9   : > { %v404_v39 = vadd.f32 %v403_v38, %v323_v35 }
  0xaa   : > { %v414_v40 = vmul.f32 %v390_v37, %v390_v37 }
  0xab   : > { %v408_v41 = vadd.f32 %v404_v39, %v390_v37  ;;  %v415_v42 = vmul.f32 %v404_v39, %v404_v39 }
  0xad   : > { %409 = vadd.xlane.f32.xlu0 %v408_v41  ;;  %v418_v43 = vadd.f32 %v415_v42, %v414_v40  ;;  %v484_v40 = vld [vmem:[%s1052_s5 + $0x10] sm:$0xff]  ;;  %v485_v41 = vld [vmem:[%s1052_s5 + $0x18] sm:$0xff] }
  0xaf   : > { %419 = vadd.xlane.f32.xlu1 %v418_v43  ;;  %v391_v44 = vpop.f32.mrf.mxu0 }
  0xb0   : > { %v976_v45 = vadd.f32 %v391_v44, %v322_v34  ;;  %v405_v46 = vpop.f32.mrf.mxu1 }
  0xb1   : > { %v978_v47 = vadd.f32 %v405_v46, %v323_v35 }
  0xb2   : > { %v416_v48 = vmul.f32 %v976_v45, %v976_v45 }
  0xb3   : > { %v411_v49 = vadd.f32 %v978_v47, %v976_v45  ;;  %v417_v50 = vmul.f32 %v978_v47, %v978_v47 }
  0xb5   : > { %412 = vadd.xlane.f32.xlu0 %v411_v49  ;;  %v421_v51 = vadd.f32 %v417_v50, %v416_v48 }
  0xb7   : > { %422 = vadd.xlane.f32.xlu1 %v421_v51 }
 0x120   : > { %v410_v52 = vpop.xlane.xlu0 %409 }
 0x121   : > { %v424_v53 = vmul.f32 0.00390625, %v410_v52 }
 0x122   : > { %v420_v54 = vpop.xlane.xlu1 %419 }
 0x123   : > { %v426_v55 = vmul.f32 0.00390625, %v420_v54  ;;  %v428_v56 = vmul.f32 %v424_v53, %v424_v53  ;;  %v432_v12 = vsub.f32 %v390_v37, %v424_v53  ;;  %v433_v13 = vsub.f32 %v404_v39, %v424_v53 }
 0x125   : > { %v430_v57 = vsub.f32 %v426_v55, %v428_v56 }
 0x127   : > { %v436_v58 = vadd.f32 1e-05, %v430_v57 }
 0x128   : > { %v413_v59 = vpop.xlane.xlu0 %412 }
 0x129   : > { %732 = vrsqrt.f32 %v436_v58  ;;  %v425_v60 = vmul.f32 0.00390625, %v413_v59  ;;  %vm444_vm2 = vweird.f32 %v436_v58 }
 0x12a   : > { %v423_v61 = vpop.xlane.xlu1 %422 }
 0x12b   : > { %v427_v62 = vmul.f32 0.00390625, %v423_v61  ;;  %v429_v63 = vmul.f32 %v425_v60, %v425_v60  ;;  %v434_v33 = vsub.f32 %v976_v45, %v425_v60  ;;  %v435_v34 = vsub.f32 %v978_v47, %v425_v60 }
 0x12d   : > { %v431_v0 = vsub.f32 %v427_v62, %v429_v63 }
 0x12f   : > { %v733_v1 = vpop.eup %732  ;;  %v437_v2 = vadd.f32 1e-05, %v431_v0 }
 0x130   : > { %v439_v3 = vmul.f32 %v733_v1, %v436_v58  ;;  %vm445_vm1 = vweird.f32 %v733_v1 }
 0x131   : > { %734 = vrsqrt.f32 %v437_v2  ;;  %vm446_vm3 = vmor %vm444_vm2, %vm445_vm1  ;;  %vm454_vm5 = vweird.f32 %v437_v2 }
 0x132   : > { %v440_v4 = vmul.f32 %v733_v1, %v439_v3 }
 0x134   : > { %v441_v5 = vmul.f32 0.5, %v440_v4 }
 0x136   : > { %v442_v7 = vsub.f32 1.5, %v441_v5 }
 0x137   : > { %v735_v8 = vpop.eup %734 }
 0x138   : > { %v443_v10 = vmul.f32 %v733_v1, %v442_v7  ;;  %v449_v11 = vmul.f32 %v735_v8, %v437_v2  ;;  %vm455_vm4 = vweird.f32 %v735_v8 }
 0x139   : > { %vm456_vm6 = vmor %vm454_vm5, %vm455_vm4 }
 0x13a   : > { %v447_v16 = vsel %vm446_vm3, %v733_v1, %v443_v10  ;;  %v450_v17 = vmul.f32 %v735_v8, %v449_v11 }
 0x13b   : > { %v458_v20 = vmul.f32 %v447_v16, %v432_v12  ;;  %v459_v21 = vmul.f32 %v447_v16, %v433_v13 }
 0x13c   : > { %v451_v22 = vmul.f32 0.5, %v450_v17 }
 0x13d   : > { %v468_v23 = vmul.f32 %v464_v14, %v458_v20  ;;  %v469_v24 = vmul.f32 %v465_v15, %v459_v21 }
 0x13e   : > { %v452_v27 = vsub.f32 1.5, %v451_v22 }
 0x13f   : > { %v478_v28 = vadd.f32 %v474_v18, %v468_v23  ;;  %v479_v29 = vadd.f32 %v475_v19, %v469_v24 }
 0x140   : > { %v453_v30 = vmul.f32 %v735_v8, %v452_v27 }
 0x141   : > { %v486_v31 = vadd.f32 %v482_v25, %v478_v28  ;;  %v487_v32 = vadd.f32 %v483_v26, %v479_v29 }
 0x142   : > { %v457_v35 = vsel %vm456_vm6, %v735_v8, %v453_v30 }
 0x143   : > { %v460_v36 = vmul.f32 %v457_v35, %v434_v33  ;;  %v461_v37 = vmul.f32 %v457_v35, %v435_v34  ;;  %490 = vst [vmem:[%s287_s13] sm:$0xff] %v486_v31 }
 0x144   : > { %491 = vst [vmem:[%s287_s13 + $0x8] sm:$0xff] %v487_v32 }
 0x145   : > { %v470_v38 = vmul.f32 %v464_v14, %v460_v36  ;;  %v471_v39 = vmul.f32 %v465_v15, %v461_v37 }
 0x147   : > { %v480_v42 = vadd.f32 %v474_v18, %v470_v38  ;;  %v481_v43 = vadd.f32 %v475_v19, %v471_v39 }
 0x149   : > { %v488_v44 = vadd.f32 %v484_v40, %v480_v42  ;;  %v489_v45 = vadd.f32 %v485_v41, %v481_v43 }
 0x14b   : > { %492 = vst [vmem:[%s287_s13 + $0x10] sm:$0xff] %v488_v44 }
 0x14c   : > { %493 = vst [vmem:[%s287_s13 + $0x18] sm:$0xff] %v489_v45 }
 0x14d   : > { %763 = shalt.err (!%p760_p5)
}
 0x14e   : > { %s816_s20 = smov 256   ;;  %s817_s13 = smov 16  }
 0x14f   : > { %675 = dma.vmem_to_hbm [thread:$0]  (%p893_p4), %s511_s28, 512, %s513_s27, %s495_s30, %s816_s20, %s816_s20, %s817_s13  }
 0x150 PF: > { %p681_p6 = scmp.ge.s32.totalorder %s814_s26, 2  ;;  %s527_s17 = sand.u32 1, %s794_s21  }
 0x151   : > { %s528_s18 = scalar_lea.sflag [#allocation3], %s527_s17 }
 0x152   : > { %p678_p7 = pnand %p681_p6, %p900_p8 }
 0x154   : > { %p679_p9 = pneg %p678_p7 }
 0x156   : > { %789 = dma.done.wait (%p679_p9), %s528_s18, 512  }
 0x157   : > { %791 = vsyncadd (%p679_p9), %s528_s18, 4294966784  ;;  %s19_s26 = sadd.s32 1, %s814_s26   ;;  %s1056_s21 = smov %s798_s22 }
 0x158   : > { %p16_p10 = scmp.ge.s32.totalorder %s19_s26, 4   ;;  %s1057_s22 = smov %s802_s23 }
 0x159   : > { %s1058_s23 = smov %s906_s10  ;;  %s1059_s24 = smov %s810_s25 }
 0x15a   : > { %s1060_s25 = smov %s1062_s29  ;;  %18 = sbr.rel (!%p16_p10) target bundleno = 4 (0x4), region = 82 }
 0x15f   :  { %534 = vsyncpa [#allocation3], 1 }
 0x160   :  { %536 = vsyncpa [#allocation3 + $0x1], 1 }

</bundles_post_ra>
